<compile_context>
chip_gen: v7x
topology: tpu7x:2x2x1
jax: 0.10.0
libtpu: 0.0.40
codegen_flags: <defaults>
</compile_context>

<pallas_src>
import jax
import jax.numpy as jnp
from jax.experimental import pallas as pl
from jax.experimental.pallas import tpu as pltpu


_SUBLANE = 8
_LANE = 128
# Double-buffered per-step tile footprint target: fits v7x's 64 MiB/TC with headroom;
# v5e/v6e (128 MiB) simply have more slack.
_VMEM_PIPELINE_BUDGET = 24 * 1024 * 1024
# > v5e's 16 MiB scoped default, comfortably < v7x's 64 MiB physical VMEM.
_VMEM_LIMIT_BYTES = 40 * 1024 * 1024
_TARGET_GRID_STEPS = 8     # enough steps for real pipelining + both v7x TensorCores
_MIN_TILE_ROWS = 512       # ~85% of HBM roofline already reached at ~512-row tiles


def _round_up(x, m):
    return -(-x // m) * m


def _vmem_block_bytes(tile_nc, tile_h, w, half, itemsize):
    """Padded, double-buffered VMEM footprint of one grid step's blocks."""
    # Conservative: pad sublanes to 16 (covers bf16 packing) and lanes to 128.
    h_pad = _round_up(max(tile_h, 1), 2 * _SUBLANE)
    data = tile_nc * h_pad * (_round_up(w, _LANE) + _round_up(half, _LANE)) * itemsize
    params = _round_up(tile_nc, _SUBLANE) * _LANE * 4   # one (tile_nc, 3) f32 block
    return 2 * (data + params)                           # x2: double buffering


def _choose_tiles(nc, h, w, itemsize):
    """Pick (tile_nc, tile_h) for blocks of the (N*C, H, W) input."""
    half = w // 2
    bb = lambda tnc, th: _vmem_block_bytes(tnc, th, w, half, itemsize)

    # The (tile_nc, 3) param block needs tile_nc % 8 == 0 or tile_nc == NC.
    base_nc = min(nc, _SUBLANE)

    if bb(base_nc, h) > _VMEM_PIPELINE_BUDGET:
        # Full-H slabs are too big: keep tile_nc minimal-legal and split H instead.
        tile_nc = base_nc
        tile_h = h
        while tile_h > _SUBLANE and bb(tile_nc, tile_h) > _VMEM_PIPELINE_BUDGET:
            tile_h = max(_SUBLANE, ((tile_h // 2) // _SUBLANE) * _SUBLANE)
        return tile_nc, tile_h

    # Full-H blocks: fill the budget, but keep the pipeline deep (>= ~8 grid steps when
    # the problem is big enough) and tiles at >= ~512 rows so per-step overhead amortises.
    budget_cap = max(1, _VMEM_PIPELINE_BUDGET // bb(1, h))
    steps_cap = max(1, nc // _TARGET_GRID_STEPS)
    rows_floor = max(1, -(-_MIN_TILE_ROWS // h))
    tile_nc = min(budget_cap, nc, max(steps_cap, rows_floor))
    if tile_nc < nc:
        tile_nc = max(_SUBLANE, (tile_nc // _SUBLANE) * _SUBLANE)
        tile_nc = min(tile_nc, nc)
    return tile_nc, h


def split_fuse_kernel(x_ref, p_ref, o_ref):
    """relu(wl*left + wr*right + b) with the torch.chunk done by a lane slice.

    x_ref : VMEM (tile_nc, tile_h, W)   full-width rows for tile_nc (n,c) slabs.
    p_ref : VMEM (tile_nc, 3) f32       per-(n,c) params [wl, wr, b].
    o_ref : VMEM (tile_nc, tile_h, W//2).
    """
    half = o_ref.shape[-1]
    x = x_ref[...]
    p = p_ref[...]
    tnc = p.shape[0]
    wl = p[:, 0:1].reshape(tnc, 1, 1)
    wr = p[:, 1:2].reshape(tnc, 1, 1)
    b = p[:, 2:3].reshape(tnc, 1, 1)

    left = x[..., :half].astype(jnp.float32)
    right = x[..., half:].astype(jnp.float32)
    fused = left * wl + right * wr + b
    o_ref[...] = jnp.maximum(fused, 0.0).astype(o_ref.dtype)


def split_forward(x, wl_c, wr_c, b_c):
    """x: (N, C, H, W); wl_c/wr_c/b_c: (C,) per-channel params of the wrapped model."""
    N, C, H, W = x.shape
    assert W % 2 == 0, "torch.chunk(img, 2, dim=3) needs even W for exact halves"
    half = W // 2
    NC = N * C

    # Contiguous (free) reshape: slab index nc = n*C + c.
    x3 = x.reshape(NC, H, W)

    # Stacked per-(n,c) params: (NC, 3) f32 — N*C*12 bytes total, one VMEM block/step.
    params_c = jnp.stack([wl_c, wr_c, b_c], axis=1).astype(jnp.float32)   # (C, 3)
    params_nc = jnp.tile(params_c, (N, 1))                                 # (NC, 3)

    tile_nc, tile_h = _choose_tiles(NC, H, W, x.dtype.itemsize)
    grid = (pl.cdiv(NC, tile_nc), pl.cdiv(H, tile_h))

    itemsize = x.dtype.itemsize
    cost = pl.CostEstimate(
        flops=int(5 * NC * H * half),                       # 2 mul + 2 add + 1 max / elem
        transcendentals=0,
        bytes_accessed=int(NC * H * W * itemsize            # input read
                           + NC * H * half * itemsize       # output write
                           + NC * 3 * 4),                   # params read
    )

    out3 = pl.pallas_call(
        split_fuse_kernel,
        out_shape=jax.ShapeDtypeStruct((NC, H, half), x.dtype),
        grid=grid,
        in_specs=[
            pl.BlockSpec((tile_nc, tile_h, W), lambda i, j: (i, j, 0)),
            pl.BlockSpec((tile_nc, 3), lambda i, j: (i, 0)),
        ],
        out_specs=pl.BlockSpec((tile_nc, tile_h, half), lambda i, j: (i, j, 0)),
        compiler_params=pltpu.CompilerParams(
            dimension_semantics=("parallel", "parallel"),
            vmem_limit_bytes=_VMEM_LIMIT_BYTES,
        ),
        cost_estimate=cost,
    )(x3, params_nc)

    return out3.reshape(N, C, H, half)


def split_forward_ref(x, wl_c, wr_c, b_c):
    """Pure-JAX reference mirroring the PyTorch semantics."""
    half = x.shape[3] // 2
    left, right = x[..., :half], x[..., half:]
    wl = wl_c[None, :, None, None].astype(jnp.float32)
    wr = wr_c[None, :, None, None].astype(jnp.float32)
    b = b_c[None, :, None, None].astype(jnp.float32)
    return jnp.maximum(left * wl + right * wr + b, 0.0).astype(x.dtype)


if __name__ == "__main__":
    key = jax.random.PRNGKey(0)
    k1, k2 = jax.random.split(key)

    C = 4
    # Deterministic synthetic parameters for the wrapped model.
    wl_c = 0.5 + 0.1 * jnp.arange(C, dtype=jnp.float32)
    wr_c = 1.0 - 0.05 * jnp.arange(C, dtype=jnp.float32)
    b_c = 0.01 * jnp.arange(C, dtype=jnp.float32)

    # 1) Small NCHW image (half=8 < 128 -> lane-masked store path, full-W slice in-kernel).
    N, H, W = 2, 16, 16
    x = jax.random.normal(k1, (N, C, H, W), dtype=jnp.float32)
    out = jax.block_until_ready(split_forward(x, wl_c, wr_c, b_c))
    ref = split_forward_ref(x, wl_c, wr_c, b_c)
    assert out.shape == (N, C, H, W // 2), out.shape
    assert jnp.allclose(out, ref, atol=1e-5, rtol=1e-5), "small-W path mismatch vs reference"

    # 2) Wider image (half=128 -> lane-aligned in-kernel chunk, lane-dense output store).
    N2, H2, W2 = 2, 8, 256
    x2 = jax.random.normal(k2, (N2, C, H2, W2), dtype=jnp.float32)
    out2 = jax.block_until_ready(split_forward(x2, wl_c, wr_c, b_c))
    ref2 = split_forward_ref(x2, wl_c, wr_c, b_c)
    assert out2.shape == (N2, C, H2, W2 // 2), out2.shape
    assert jnp.allclose(out2, ref2, atol=1e-5, rtol=1e-5), "aligned path mismatch vs reference"

    print("KERNEL_OK")
</pallas_src>

<mosaic_0001>
module attributes {stable_mosaic.version = 11 : i64} {
  func.func @split_fuse_kernel(%arg0: i32, %arg1: i32, %arg2: memref<8x16x16xf32, #tpu.memory_space<vmem>>, %arg3: memref<8x3xf32, #tpu.memory_space<vmem>>, %arg4: memref<8x16x8xf32, #tpu.memory_space<vmem>>) attributes {dimension_semantics = [#tpu.dimension_semantics<parallel>, #tpu.dimension_semantics<parallel>], iteration_bounds = array<i64: 1, 1>, scalar_prefetch = 0 : i64, scratch_operands = 0 : i64, tpu.core_type = #tpu.core_type<tc>, window_params = [{transform_indices = @transform_0, window_bounds = array<i64: 8, 16, 16>}, {transform_indices = @transform_1, window_bounds = array<i64: 8, 3>}, {transform_indices = @transform_2, window_bounds = array<i64: 8, 16, 8>}]} {
    %c0 = arith.constant 0 : index
    %c0_0 = arith.constant 0 : index
    %c0_1 = arith.constant 0 : index
    %0 = vector.load %arg2[%c0, %c0_0, %c0_1] : memref<8x16x16xf32, #tpu.memory_space<vmem>>, vector<8x16x16xf32>
    %c0_2 = arith.constant 0 : index
    %c0_3 = arith.constant 0 : index
    %1 = vector.load %arg3[%c0_2, %c0_3] : memref<8x3xf32, #tpu.memory_space<vmem>>, vector<8x3xf32>
    %2 = vector.extract_strided_slice %1 {offsets = [0, 0], sizes = [8, 1], strides = [1, 1]} : vector<8x3xf32> to vector<8x1xf32>
    %3 = vector.shape_cast %2 : vector<8x1xf32> to vector<8x1x1xf32>
    %4 = vector.extract_strided_slice %1 {offsets = [0, 1], sizes = [8, 1], strides = [1, 1]} : vector<8x3xf32> to vector<8x1xf32>
    %5 = vector.shape_cast %4 : vector<8x1xf32> to vector<8x1x1xf32>
    %6 = vector.extract_strided_slice %1 {offsets = [0, 2], sizes = [8, 1], strides = [1, 1]} : vector<8x3xf32> to vector<8x1xf32>
    %7 = vector.shape_cast %6 : vector<8x1xf32> to vector<8x1x1xf32>
    %8 = vector.extract_strided_slice %0 {offsets = [0, 0, 0], sizes = [8, 16, 8], strides = [1, 1, 1]} : vector<8x16x16xf32> to vector<8x16x8xf32>
    %9 = vector.extract_strided_slice %0 {offsets = [0, 0, 8], sizes = [8, 16, 8], strides = [1, 1, 1]} : vector<8x16x16xf32> to vector<8x16x8xf32>
    %10 = vector.broadcast %3 : vector<8x1x1xf32> to vector<8x16x8xf32>
    %11 = arith.mulf %8, %10 : vector<8x16x8xf32>
    %12 = vector.broadcast %5 : vector<8x1x1xf32> to vector<8x16x8xf32>
    %13 = arith.mulf %9, %12 : vector<8x16x8xf32>
    %14 = arith.addf %11, %13 : vector<8x16x8xf32>
    %15 = vector.broadcast %7 : vector<8x1x1xf32> to vector<8x16x8xf32>
    %16 = arith.addf %14, %15 : vector<8x16x8xf32>
    %cst = arith.constant 0.000000e+00 : f32
    %17 = vector.broadcast %cst : f32 to vector<8x16x8xf32>
    %18 = arith.maximumf %16, %17 : vector<8x16x8xf32>
    %c0_4 = arith.constant 0 : index
    %c0_5 = arith.constant 0 : index
    %c0_6 = arith.constant 0 : index
    %19 = vector.load %arg4[%c0_4, %c0_5, %c0_6] : memref<8x16x8xf32, #tpu.memory_space<vmem>>, vector<8x16x8xf32>
    tpu.vector_store %arg4[%c0_4, %c0_5, %c0_6], %18 {strides = array<i32>} : memref<8x16x8xf32, #tpu.memory_space<vmem>>, vector<8x16x8xf32>,
    return
  }
  func.func @transform_0(%arg0: i32, %arg1: i32) -> (i32, i32, i32) {
    %c0_i32 = arith.constant 0 : i32
    %c0_i32_0 = arith.constant 0 : i32
    return %arg0, %arg1, %c0_i32 : i32, i32, i32
  }
  func.func @transform_1(%arg0: i32, %arg1: i32) -> (i32, i32) {
    %c0_i32 = arith.constant 0 : i32
    %c0_i32_0 = arith.constant 0 : i32
    return %arg0, %c0_i32 : i32, i32
  }
  func.func @transform_2(%arg0: i32, %arg1: i32) -> (i32, i32, i32) {
    %c0_i32 = arith.constant 0 : i32
    %c0_i32_0 = arith.constant 0 : i32
    return %arg0, %arg1, %c0_i32 : i32, i32, i32
  }
}

</mosaic_0001>

<bundles_post_ra>
// kernel: tpu_custom_call.1
= control target key start
LH: loop header
LB: loop body
LE: loop exit
PB: predicated region body
PF: predicated region fallthrough
CT: control target
= control target key end

     0   :  { %7 = vsyncpa [#allocation3], 0  ;;  %s425_s9 = smov [#allocation2]   ;;  %s635_s0 = inlined_call_operand.hbm [shape: f32[8,16,16], index: 0, kind: input, shape index: {}]   ;;  %s636_s1 = inlined_call_operand.vmem [shape: f32[8,3], index: 1, kind: input, shape index: {}]   ;;  %s637_s2 = inlined_call_operand.vmem [shape: f32[8,16,8], index: 2, kind: output, shape index: {}]  }
   0x1   :  { %s13_s10 = sshll.u32 %s425_s9, 4  ;;  %s401_s13 = scalar_lea.hbm %s635_s0, 2048  ;;  %s14_s10 = int_to_ptr.vmem [resolvable:$true] %s13_s10 }
   0x2   :  { %p402_p0 = scmp.ne.s32.totalorder %s635_s0, %s401_s13  ;;  %p405_p1 = scmp.lt.u32.totalorder %s401_s13, %s635_s0 }
   0x4   :  { %p407_p2 = pnand %p405_p1, %p402_p0 }
   0x6   :  { %410 = shalt.err (!%p407_p2)
}
   0x7   :  { %s411_s18 = scalar_lea.vmem %s14_s10, 2048  ;;  %p416_p4 = scmp.lt.s32.totalorder %s14_s10, %s14_s10 }
   0x8   :  { %p412_p3 = scmp.ne.s32.totalorder %s14_s10, %s411_s18  ;;  %p417_p5 = scmp.lt.s32.totalorder %s411_s18, %s411_s18 }
   0xa   :  { %p418_p6 = por %p417_p5, %p416_p4 }
   0xc   :  { %p419_p7 = pnand %p418_p6, %p412_p3 }
   0xe   :  { %422 = shalt.err (!%p419_p7)
}
   0xf   :  { %s426_s19 = smov 128   ;;  %s427_s20 = smov 8  }
  0x10   :  { %19 = dma.hbm_to_vmem [thread:$0]  %s635_s0, 2048, %s14_s10, [#allocation3], %s426_s19, %s426_s19, %s427_s20  }
  0x11   :  { %423 = dma.done.wait [#allocation3], 2048  }
  0x12   :  { %424 = vsyncadd [#allocation3], 4294965248  ;;  %v47_v0 = vlaneseq  ;;  %v428_v1 = vmov 1   ;;  %v429_v2 = vmov 1966171168   ;;  %v41_v7 = vld [vmem:[%s636_s1] sm:$0xff] }
  0x13   :  { %394 = vset.pattern.permute.xlu0 %v428_v1  ;;  %v45_v3 = vunpack.c.l.s4 %v429_v2  ;;  %395 = vset.pattern.permute.xlu1 %v428_v1  ;;  %v43_v10 = vcombine.high %v41_v7, %v41_v7  ;;  %v430_v30 = vmov 0   ;;  %v431_v31 = vmov 2   ;;  %v463_v32 = vld [vmem:[#allocation2] sm:$0xff]  ;;  %v465_v33 = vld [vmem:[#allocation2 + $0x8] sm:$0xff]  ;;  %v469_v37 = vld [vmem:[#allocation2 + $0x10] sm:$0xff]  ;;  %s432_s0 = smov 120  }
  0x14   :  { %v48_v4 = vshrl.u32 %v47_v0, 7  ;;  %v471_v38 = vld [vmem:[#allocation2 + $0x18] sm:$0xff]  ;;  %v475_v39 = vld [vmem:[#allocation2 + $0x20] sm:$0xff]  ;;  %v477_v40 = vld [vmem:[#allocation2 + $0x28] sm:$0xff]  ;;  %vm364_vm0 = vcmask 64512  }
  0x15   :  { %v46_v5 = vunpack.c.0.s8 %v45_v3  ;;  %v485_v48 = vld [vmem:[#allocation2 + $0x40] sm:$0xff]  ;;  %v487_v49 = vld [vmem:[#allocation2 + $0x48] sm:$0xff]  ;;  %v493_v53 = vld [vmem:[#allocation2 + $0x30] sm:$0xff] }
  0x16   :  { %v94_v9 = vsub.s32 0, %v48_v4  ;;  %v495_v54 = vld [vmem:[#allocation2 + $0x38] sm:$0xff]  ;;  %v501_v58 = vld [vmem:[#allocation2 + $0x50] sm:$0xff]  ;;  %v509_v63 = vld [vmem:[#allocation2 + $0x60] sm:$0xff] }
  0x17   :  { %v49_v6 = vsub.s32 %v46_v5, %v48_v4  ;;  %v503_v59 = vld [vmem:[#allocation2 + $0x58] sm:$0xff]  ;;  %v511_v0 = vld [vmem:[#allocation2 + $0x68] sm:$0xff]  ;;  %v517_v4 = vld [vmem:[#allocation2 + $0x70] sm:$0xff] }
  0x18   :  { %v519_v5 = vld [vmem:[#allocation2 + $0x78] sm:$0xff] }
  0x19   :  { %v50_v8 = vrot.slane %v41_v7, %v49_v6  ;;  %v57_v13 = vrot.slane %v43_v10, %v49_v6 }
  0x1b   :  { %v66_v11 = vrot.slane %v50_v8, %v49_v6  ;;  %v58_v12 = vcombine.high %v50_v8, %v50_v8  ;;  %v59_v17 = vcombine.high %v57_v13, %v57_v13  ;;  %v73_v21 = vrot.slane %v57_v13, %v49_v6 }
  0x1d   :  { %v95_v14 = vrot.slane %v66_v11, %v94_v9  ;;  %v88_v15 = vcombine.high %v66_v11, %v66_v11  ;;  %v80_v16 = vrot.slane %v58_v12, %v49_v6  ;;  %v87_v23 = vrot.slane %v59_v17, %v49_v6 }
  0x1e   :  { %v111_v24 = vrot.slane %v73_v21, %v94_v9  ;;  %v89_v25 = vcombine.high %v73_v21, %v73_v21 }
  0x1f   :  { %173 = vperm.xlu0 %394, %v95_v14   ;;  %v103_v18 = vrot.slane %v88_v15, %v94_v9  ;;  %v99_v19 = vrot.slane %v80_v16, %v94_v9  ;;  %v90_v20 = vcombine.high %v80_v16, %v80_v16  ;;  %v115_v26 = vrot.slane %v87_v23, %v94_v9 }
  0x20   :  { %v91_v27 = vcombine.high %v87_v23, %v87_v23  ;;  %v119_v28 = vrot.slane %v89_v25, %v94_v9 }
  0x21   :  { %181 = vperm.xlu1 %395, %v103_v18   ;;  %v107_v22 = vrot.slane %v90_v20, %v94_v9 }
  0x22   :  { %v123_v29 = vrot.slane %v91_v27, %v94_v9 }
  0x23   :  { %177 = vperm.xlu0 %394, %v99_v19  }
  0x25   :  { %185 = vperm.xlu1 %395, %v107_v22  }
  0x27   :  { %189 = vperm.xlu0 %394, %v111_v24  }
  0x29   :  { %193 = vperm.xlu1 %395, %v115_v26  }
  0x2b   :  { %197 = vperm.xlu0 %394, %v119_v28  }
  0x2d   :  { %201 = vperm.xlu1 %395, %v123_v29  }
  0x2f   :  { %396 = vset.pattern.permute.xlu0 %v430_v30 }
  0x30   :  { %125 = vperm.xlu0 %396, %v95_v14  }
  0x31   :  { %397 = vset.pattern.permute.xlu1 %v430_v30 }
  0x32   :  { %129 = vperm.xlu1 %397, %v99_v19  }
  0x34   :  { %137 = vperm.xlu0 %396, %v107_v22  }
  0x36   :  { %133 = vperm.xlu1 %397, %v103_v18  }
  0x38   :  { %145 = vperm.xlu0 %396, %v115_v26  }
  0x3a   :  { %141 = vperm.xlu1 %397, %v111_v24  }
  0x3c   :  { %153 = vperm.xlu0 %396, %v123_v29  }
  0x3e   :  { %149 = vperm.xlu1 %397, %v119_v28  }
  0x40   :  { %399 = vset.pattern.permute.xlu0 %v431_v31 }
  0x41   :  { %305 = vperm.xlu0 %399, %v99_v19  }
  0x42   :  { %398 = vset.pattern.permute.xlu1 %v431_v31 }
  0x43   :  { %301 = vperm.xlu1 %398, %v95_v14  }
  0x45   :  { %317 = vperm.xlu0 %399, %v111_v24  }
  0x47   :  { %309 = vperm.xlu1 %398, %v103_v18  }
  0x49   :  { %325 = vperm.xlu0 %399, %v119_v28  }
  0x4b   :  { %313 = vperm.xlu1 %398, %v107_v22  }
  0x4f   :  { %321 = vperm.xlu1 %398, %v115_v26  }
  0x53   :  { %329 = vperm.xlu1 %398, %v123_v29  }
  0x9e   :  { %v174_v34 = vpop.permute.xlu0 %173 }
  0x9f   :  { %v204_v35 = vmul.f32 %v174_v34, %v463_v32  ;;  %v205_v36 = vmul.f32 %v174_v34, %v465_v33 }
  0xa0   :  { %v182_v44 = vpop.permute.xlu1 %181 }
  0xa1   :  { %238 = vrot.lane.b32.xlu1 %v205_v36, %s432_s0  ;;  %236 = vrot.lane.b32.xlu0 %v204_v35, %s432_s0  ;;  %v208_v45 = vmul.f32 %v182_v44, %v475_v39  ;;  %v209_v46 = vmul.f32 %v182_v44, %v477_v40 }
  0xa2   :  { %v178_v41 = vpop.permute.xlu0 %177 }
  0xa3   :  { %v206_v42 = vmul.f32 %v178_v41, %v469_v37  ;;  %v207_v43 = vmul.f32 %v178_v41, %v471_v38 }
  0xa4   :  { %v186_v50 = vpop.permute.xlu1 %185 }
  0xa5   :  { %242 = vrot.lane.b32.xlu1 %v207_v43, %s432_s0  ;;  %240 = vrot.lane.b32.xlu0 %v206_v42, %s432_s0  ;;  %v210_v55 = vmul.f32 %v186_v50, %v493_v53  ;;  %v211_v56 = vmul.f32 %v186_v50, %v495_v54 }
  0xa6   :  { %v190_v47 = vpop.permute.xlu0 %189 }
  0xa7   :  { %v212_v51 = vmul.f32 %v190_v47, %v485_v48  ;;  %v213_v52 = vmul.f32 %v190_v47, %v487_v49 }
  0xa8   :  { %v194_v57 = vpop.permute.xlu1 %193 }
  0xa9   :  { %246 = vrot.lane.b32.xlu1 %v209_v46, %s432_s0  ;;  %244 = vrot.lane.b32.xlu0 %v208_v45, %s432_s0  ;;  %v214_v60 = vmul.f32 %v194_v57, %v501_v58  ;;  %v215_v61 = vmul.f32 %v194_v57, %v503_v59 }
  0xaa   :  { %v198_v62 = vpop.permute.xlu0 %197 }
  0xab   :  { %v216_v1 = vmul.f32 %v198_v62, %v509_v63  ;;  %v217_v2 = vmul.f32 %v198_v62, %v511_v0 }
  0xac   :  { %v202_v3 = vpop.permute.xlu1 %201 }
  0xad   :  { %254 = vrot.lane.b32.xlu1 %v213_v52, %s432_s0  ;;  %252 = vrot.lane.b32.xlu0 %v212_v51, %s432_s0  ;;  %v218_v6 = vmul.f32 %v202_v3, %v517_v4  ;;  %v219_v7 = vmul.f32 %v202_v3, %v519_v5 }
  0xaf   :  { %v126_v11 = vpop.permute.xlu0 %125 }
  0xb0   :  { %v156_v24 = vmul.f32 %v126_v11, %v463_v32  ;;  %v157_v25 = vmul.f32 %v126_v11, %v465_v33 }
  0xb1   :  { %250 = vrot.lane.b32.xlu1 %v211_v56, %s432_s0  ;;  %248 = vrot.lane.b32.xlu0 %v210_v55, %s432_s0  ;;  %v130_v8 = vpop.permute.xlu1 %129 }
  0xb2   :  { %v158_v30 = vmul.f32 %v130_v8, %v469_v37  ;;  %v159_v31 = vmul.f32 %v130_v8, %v471_v38 }
  0xb3   :  { %v138_v13 = vpop.permute.xlu0 %137 }
  0xb4   :  { %v163_v3 = vmul.f32 %v138_v13, %v495_v54 }
  0xb5   :  { %258 = vrot.lane.b32.xlu1 %v215_v61, %s432_s0  ;;  %256 = vrot.lane.b32.xlu0 %v214_v60, %s432_s0  ;;  %v134_v9 = vpop.permute.xlu1 %133 }
  0xb6   :  { %v160_v32 = vmul.f32 %v134_v9, %v475_v39  ;;  %v161_v33 = vmul.f32 %v134_v9, %v477_v40 }
  0xb7   :  { %v529_v15 = vpop.permute.xlu0 %145 }
  0xb8   :  { %v166_v54 = vmul.f32 %v529_v15, %v501_v58 }
  0xb9   :  { %262 = vrot.lane.b32.xlu1 %v217_v2, %s432_s0  ;;  %260 = vrot.lane.b32.xlu0 %v216_v1, %s432_s0  ;;  %v142_v10 = vpop.permute.xlu1 %141 }
  0xba   :  { %v164_v40 = vmul.f32 %v142_v10, %v485_v48  ;;  %v165_v55 = vmul.f32 %v142_v10, %v487_v49  ;;  %v162_v49 = vmul.f32 %v138_v13, %v493_v53  ;;  %v167_v13 = vmul.f32 %v529_v15, %v503_v59 }
  0xbb   :  { %v531_v17 = vpop.permute.xlu0 %153 }
  0xbd   :  { %266 = vrot.lane.b32.xlu1 %v219_v7, %s432_s0  ;;  %264 = vrot.lane.b32.xlu0 %v218_v6, %s432_s0  ;;  %v527_v12 = vpop.permute.xlu1 %149 }
  0xbe   :  { %v168_v15 = vmul.f32 %v527_v12, %v509_v63 }
  0xc0   :  { %v306_v19 = vpop.permute.xlu0 %305 }
  0xc2   :  { %v302_v14 = vpop.permute.xlu1 %301 }
  0xc4   :  { %v318_v21 = vpop.permute.xlu0 %317 }
  0xc6   :  { %v310_v16 = vpop.permute.xlu1 %309 }
  0xc8   :  { %v539_v23 = vpop.permute.xlu0 %325 }
  0xca   :  { %v533_v18 = vpop.permute.xlu1 %313 }
  0xce   :  { %v535_v20 = vpop.permute.xlu1 %321 }
  0xd2   :  { %v537_v22 = vpop.permute.xlu1 %329 }
 0x113   :  { %v239_v26 = vpop.permute.xlu1 %238  ;;  %v237_v27 = vpop.permute.xlu0 %236 }
 0x114   :  { %v285_v28 = vadd.f32 %v239_v26, %v157_v25  ;;  %v284_v29 = vadd.f32 %v237_v27, %v156_v24  ;;  %v169_v27 = vmul.f32 %v527_v12, %v511_v0  ;;  %v170_v12 = vmul.f32 %v531_v17, %v517_v4 }
 0x116   :  { %v333_v34 = vadd.f32 %v302_v14, %v285_v28  ;;  %v332_v35 = vadd.f32 %v302_v14, %v284_v29 }
 0x117   :  { %v243_v36 = vpop.permute.xlu1 %242  ;;  %v241_v41 = vpop.permute.xlu0 %240 }
 0x118   :  { %v349_v42 = vmax.f32 %v333_v34, 0.0  ;;  %v348_v43 = vmax.f32 %v332_v35, 0.0  ;;  %v287_v44 = vadd.f32 %v243_v36, %v159_v31  ;;  %v286_v45 = vadd.f32 %v241_v41, %v158_v30 }
 0x119   :  { %v171_v35 = vmul.f32 %v531_v17, %v519_v5 }
 0x11a   :  { %366 = vst.msk [vmem:[%s637_s2 + $0x8] sm:$0xff] %vm364_vm0, %v349_v42  ;;  %365 = vst.msk [vmem:[%s637_s2] sm:$0xff] %vm364_vm0, %v348_v43  ;;  %v335_v37 = vadd.f32 %v306_v19, %v287_v44  ;;  %v334_v38 = vadd.f32 %v306_v19, %v286_v45 }
 0x11b   :  { %v247_v46 = vpop.permute.xlu1 %246  ;;  %v245_v47 = vpop.permute.xlu0 %244 }
 0x11c   :  { %v351_v50 = vmax.f32 %v335_v37, 0.0  ;;  %v350_v51 = vmax.f32 %v334_v38, 0.0  ;;  %v289_v52 = vadd.f32 %v247_v46, %v161_v33  ;;  %v288_v39 = vadd.f32 %v245_v47, %v160_v32 }
 0x11e   :  { %368 = vst.msk [vmem:[%s637_s2 + $0x18] sm:$0xff] %vm364_vm0, %v351_v50  ;;  %367 = vst.msk [vmem:[%s637_s2 + $0x10] sm:$0xff] %vm364_vm0, %v350_v51  ;;  %v337_v56 = vadd.f32 %v310_v16, %v289_v52  ;;  %v336_v57 = vadd.f32 %v310_v16, %v288_v39 }
 0x11f   :  { %v255_v60 = vpop.permute.xlu1 %254  ;;  %v253_v61 = vpop.permute.xlu0 %252 }
 0x120   :  { %v353_v62 = vmax.f32 %v337_v56, 0.0  ;;  %v352_v1 = vmax.f32 %v336_v57, 0.0  ;;  %v293_v2 = vadd.f32 %v255_v60, %v165_v55  ;;  %v292_v48 = vadd.f32 %v253_v61, %v164_v40 }
 0x122   :  { %370 = vst.msk [vmem:[%s637_s2 + $0x28] sm:$0xff] %vm364_vm0, %v353_v62  ;;  %369 = vst.msk [vmem:[%s637_s2 + $0x20] sm:$0xff] %vm364_vm0, %v352_v1  ;;  %v341_v6 = vadd.f32 %v318_v21, %v293_v2  ;;  %v340_v7 = vadd.f32 %v318_v21, %v292_v48 }
 0x123   :  { %v251_v8 = vpop.permute.xlu1 %250  ;;  %v249_v9 = vpop.permute.xlu0 %248 }
 0x124   :  { %v357_v10 = vmax.f32 %v341_v6, 0.0  ;;  %v356_v11 = vmax.f32 %v340_v7, 0.0  ;;  %v291_v14 = vadd.f32 %v251_v8, %v163_v3  ;;  %v290_v53 = vadd.f32 %v249_v9, %v162_v49 }
 0x126   :  { %374 = vst.msk [vmem:[%s637_s2 + $0x48] sm:$0xff] %vm364_vm0, %v357_v10  ;;  %373 = vst.msk [vmem:[%s637_s2 + $0x40] sm:$0xff] %vm364_vm0, %v356_v11  ;;  %v339_v16 = vadd.f32 %v533_v18, %v291_v14  ;;  %v338_v19 = vadd.f32 %v533_v18, %v290_v53 }
 0x127   :  { %v259_v21 = vpop.permute.xlu1 %258  ;;  %v257_v24 = vpop.permute.xlu0 %256 }
 0x128   :  { %v355_v58 = vmax.f32 %v339_v16, 0.0  ;;  %v354_v25 = vmax.f32 %v338_v19, 0.0  ;;  %v295_v26 = vadd.f32 %v259_v21, %v167_v13  ;;  %v294_v59 = vadd.f32 %v257_v24, %v166_v54 }
 0x12a   :  { %372 = vst.msk [vmem:[%s637_s2 + $0x38] sm:$0xff] %vm364_vm0, %v355_v58  ;;  %371 = vst.msk [vmem:[%s637_s2 + $0x30] sm:$0xff] %vm364_vm0, %v354_v25  ;;  %v343_v18 = vadd.f32 %v535_v20, %v295_v26  ;;  %v342_v28 = vadd.f32 %v535_v20, %v294_v59 }
 0x12b   :  { %v263_v29 = vpop.permute.xlu1 %262  ;;  %v261_v30 = vpop.permute.xlu0 %260 }
 0x12c   :  { %v359_v63 = vmax.f32 %v343_v18, 0.0  ;;  %v358_v31 = vmax.f32 %v342_v28, 0.0  ;;  %v297_v34 = vadd.f32 %v263_v29, %v169_v27  ;;  %v296_v0 = vadd.f32 %v261_v30, %v168_v15 }
 0x12e   :  { %376 = vst.msk [vmem:[%s637_s2 + $0x58] sm:$0xff] %vm364_vm0, %v359_v63  ;;  %375 = vst.msk [vmem:[%s637_s2 + $0x50] sm:$0xff] %vm364_vm0, %v358_v31  ;;  %v345_v20 = vadd.f32 %v539_v23, %v297_v34  ;;  %v344_v36 = vadd.f32 %v539_v23, %v296_v0 }
 0x12f   :  { %v267_v41 = vpop.permute.xlu1 %266  ;;  %v265_v42 = vpop.permute.xlu0 %264 }
 0x130   :  { %v361_v4 = vmax.f32 %v345_v20, 0.0  ;;  %v360_v43 = vmax.f32 %v344_v36, 0.0  ;;  %v299_v44 = vadd.f32 %v267_v41, %v171_v35  ;;  %v298_v5 = vadd.f32 %v265_v42, %v170_v12 }
 0x132   :  { %378 = vst.msk [vmem:[%s637_s2 + $0x68] sm:$0xff] %vm364_vm0, %v361_v4  ;;  %377 = vst.msk [vmem:[%s637_s2 + $0x60] sm:$0xff] %vm364_vm0, %v360_v43  ;;  %v347_v17 = vadd.f32 %v537_v22, %v299_v44  ;;  %v346_v23 = vadd.f32 %v537_v22, %v298_v5 }
 0x134   :  { %v363_v45 = vmax.f32 %v347_v17, 0.0  ;;  %v362_v32 = vmax.f32 %v346_v23, 0.0 }
 0x136   :  { %380 = vst.msk [vmem:[%s637_s2 + $0x78] sm:$0xff] %vm364_vm0, %v363_v45  ;;  %379 = vst.msk [vmem:[%s637_s2 + $0x70] sm:$0xff] %vm364_vm0, %v362_v32 }
 0x137   :  { %385 = vsyncpa [#allocation3], 1 }

</bundles_post_ra>
